<compile_context>
chip_gen: v6e
topology: v6e:2x2x1
jax: 0.10.0
libtpu: 0.0.40
codegen_flags: <defaults>
</compile_context>

<pallas_src>
import jax
import jax.numpy as jnp
from jax.experimental import pallas as pl
from jax.experimental.pallas import tpu as pltpu


def basic_att_kernel(b2_ref, x_ref, mask_ref, w1_ref, b1_ref, w2_ref,
                     expand_ref, v2_ref, out_ref):
    # x: (M, H*D0) -- one batch element, all heads flattened onto the lane axis.
    x = x_ref[...]

    # attention_basic: Linear(D0 -> D1) + ReLU for all H heads in ONE matmul
    # (block-diagonal weight).  Dropout: eval no-op.
    h = jnp.dot(x, w1_ref[...], preferred_element_type=jnp.float32) + b1_ref[...]
    h = jnp.maximum(h, 0.0)                                     # (M, H*D1)

    # attention_last: Linear(D1 -> 1) per head (block-diagonal columns).
    logits = jnp.dot(h, w2_ref[...], preferred_element_type=jnp.float32)
    logits = logits + b2_ref[0]                                 # (M, H)

    # masked_fill(att_mask == 0, -1e9); mask is (M, 1), broadcast over heads.
    # (Exact ==0.0 comparison kept to match the PyTorch reference semantics.)
    logits = jnp.where(mask_ref[...] == 0.0, jnp.float32(-1e9), logits)

    # softmax over the sequence axis M (per head, heads on lanes).
    m = jnp.max(logits, axis=0, keepdims=True)                  # (1, H)
    e = jnp.exp(logits - m)                                     # (M, H)
    denom = jnp.sum(e, axis=0, keepdims=True)                   # (1, H)
    w = e * pl.reciprocal(denom, approx=True)                   # (M, H)

    # attn[h, :] = w[:, h]^T @ value2[h] for all heads at once:
    # expand per-head weights across the Dv lanes (E[h, h*Dv+d] = 1), multiply
    # by value2 packed as (M, H*Dv), reduce over M -> lane-dense (1, H*Dv).
    w_exp = jnp.dot(w, expand_ref[...], preferred_element_type=jnp.float32)  # (M, H*Dv)
    attn = jnp.sum(w_exp * v2_ref[...], axis=0, keepdims=True)               # (1, H*Dv)
    out_ref[...] = attn.astype(out_ref.dtype)


def basic_att(att_map, att_mask, value1, value2, w1, b1, w2t, b2):
    # value1 is unused by BasicAtt.forward (kept for signature parity).
    del value1
    B, H, M, D0 = att_map.shape
    Dv = value2.shape[-1]
    D1 = w1.shape[1]
    dt = att_map.dtype

    # Lane-major packing (wrapper-side, free): heads onto the lane axis.
    x_t = att_map.transpose(0, 2, 1, 3).reshape(B, M, H * D0)    # (B, M, H*D0)
    v2_t = value2.transpose(0, 2, 1, 3).reshape(B, M, H * Dv)    # (B, M, H*Dv)
    mask3 = att_mask.reshape(B, M, 1).astype(jnp.float32)        # (B, M, 1)

    # Block-diagonal weights so all H heads run as single MXU matmuls.
    eye_h = jnp.eye(H, dtype=dt)
    w1_big = jnp.kron(eye_h, w1)                                 # (H*D0, H*D1)
    b1_big = jnp.tile(b1.reshape(1, D1), (1, H))                 # (1, H*D1)
    w2_big = jnp.kron(eye_h, w2t.reshape(D1, 1))                 # (H*D1, H)
    e_exp = jnp.kron(eye_h, jnp.ones((1, Dv), dtype=dt))         # (H, H*Dv)
    b2_s = b2.reshape(1)                                         # scalar -> SMEM

    out = pl.pallas_call(
        basic_att_kernel,
        out_shape=jax.ShapeDtypeStruct((B, 1, H * Dv), dt),
        grid_spec=pltpu.PrefetchScalarGridSpec(
            num_scalar_prefetch=0,
            grid=(B,),
            in_specs=[
                pl.BlockSpec(memory_space=pltpu.MemorySpace.SMEM),       # b2
                pl.BlockSpec((None, M, H * D0), lambda b: (b, 0, 0)),    # x_t
                pl.BlockSpec((None, M, 1), lambda b: (b, 0, 0)),         # mask
                pl.BlockSpec((H * D0, H * D1), lambda b: (0, 0)),        # w1_big
                pl.BlockSpec((1, H * D1), lambda b: (0, 0)),             # b1_big
                pl.BlockSpec((H * D1, H), lambda b: (0, 0)),             # w2_big
                pl.BlockSpec((H, H * Dv), lambda b: (0, 0)),             # e_exp
                pl.BlockSpec((None, M, H * Dv), lambda b: (b, 0, 0)),    # v2_t
            ],
            out_specs=pl.BlockSpec((None, 1, H * Dv), lambda b: (b, 0, 0)),
        ),
        compiler_params=pltpu.CompilerParams(
            dimension_semantics=("parallel",)),
    )(b2_s, x_t, mask3, w1_big, b1_big, w2_big, e_exp, v2_t)
    return out.reshape(B, H, Dv)


def basic_att_reference(att_map, att_mask, value2, w1, b1, w2t, b2):
    h = jax.nn.relu(att_map @ w1 + b1)                           # (B,H,M,D1)
    logits = jnp.sum(h * w2t, axis=-1) + b2[0, 0]                # (B,H,M)
    logits = jnp.where(att_mask[:, None, :] == 0.0, -1e9, logits)
    w = jax.nn.softmax(logits, axis=-1)
    return jnp.einsum('bhm,bhmd->bhd', w, value2)


if __name__ == "__main__":
    # mid_dims = [32, 16, 1] -> attention_basic: Linear(32,16)+ReLU,
    #                           attention_last:  Linear(16,1)
    B, H, M = 2, 4, 16
    D0, D1, Dv = 32, 16, 32

    key = jax.random.PRNGKey(0)
    k_am, k_mask, k_v1, k_v2, k_w1, k_b1, k_w2, k_b2 = jax.random.split(key, 8)

    att_map = jax.random.normal(k_am, (B, H, M, D0), dtype=jnp.float32)
    att_mask = (jax.random.uniform(k_mask, (B, M)) > 0.3).astype(jnp.float32)
    value1 = jax.random.normal(k_v1, (B, H, M, Dv), dtype=jnp.float32)  # unused
    value2 = jax.random.normal(k_v2, (B, H, M, Dv), dtype=jnp.float32)

    # Parameters stored pre-transposed: y = x @ W + b.
    w1 = jax.random.normal(k_w1, (D0, D1), dtype=jnp.float32) * 0.1
    b1 = jax.random.normal(k_b1, (1, D1), dtype=jnp.float32) * 0.1
    w2t = jax.random.normal(k_w2, (1, D1), dtype=jnp.float32) * 0.1  # Linear(D1,1) weight (transposed)
    b2 = jax.random.normal(k_b2, (1, 1), dtype=jnp.float32) * 0.1

    out = basic_att(att_map, att_mask, value1, value2, w1, b1, w2t, b2)
    out = jax.block_until_ready(out)

    ref = basic_att_reference(att_map, att_mask, value2, w1, b1, w2t, b2)
    assert out.shape == (B, H, Dv)
    # approx=True softmax reciprocal (EUP path) => allow a little extra slack.
    assert jnp.allclose(out, ref, atol=1e-3, rtol=1e-3), "mismatch vs reference"

    print("KERNEL_OK")
</pallas_src>

<mosaic_0001>
module attributes {stable_mosaic.version = 11 : i64} {
  func.func @basic_att_kernel(%arg0: i32, %arg1: memref<1xf32, #tpu.memory_space<smem>>, %arg2: memref<1x16x128xf32, #tpu.memory_space<vmem>>, %arg3: memref<1x16x1xf32, #tpu.memory_space<vmem>>, %arg4: memref<128x64xf32, #tpu.memory_space<vmem>>, %arg5: memref<1x64xf32, #tpu.memory_space<vmem>>, %arg6: memref<64x4xf32, #tpu.memory_space<vmem>>, %arg7: memref<4x128xf32, #tpu.memory_space<vmem>>, %arg8: memref<1x16x128xf32, #tpu.memory_space<vmem>>, %arg9: memref<1x1x128xf32, #tpu.memory_space<vmem>>) attributes {dimension_semantics = [#tpu.dimension_semantics<parallel>], iteration_bounds = array<i64: 2>, scalar_prefetch = 0 : i64, scratch_operands = 0 : i64, tpu.core_type = #tpu.core_type<tc>, window_params = [{transform_indices = @transform_0, window_bounds = array<i64: 1>}, {transform_indices = @transform_1, window_bounds = array<i64: 1, 16, 128>}, {transform_indices = @transform_2, window_bounds = array<i64: 1, 16, 1>}, {pipeline_mode = #tpu.pipeline_mode<synchronous>, transform_indices = @transform_3, window_bounds = array<i64: 128, 64>}, {pipeline_mode = #tpu.pipeline_mode<synchronous>, transform_indices = @transform_4, window_bounds = array<i64: 1, 64>}, {pipeline_mode = #tpu.pipeline_mode<synchronous>, transform_indices = @transform_5, window_bounds = array<i64: 64, 4>}, {pipeline_mode = #tpu.pipeline_mode<synchronous>, transform_indices = @transform_6, window_bounds = array<i64: 4, 128>}, {transform_indices = @transform_7, window_bounds = array<i64: 1, 16, 128>}, {transform_indices = @transform_8, window_bounds = array<i64: 1, 1, 128>}]} {
    %c0 = arith.constant 0 : index
    %c0_0 = arith.constant 0 : index
    %c0_1 = arith.constant 0 : index
    %0 = vector.load %arg2[%c0, %c0_0, %c0_1] : memref<1x16x128xf32, #tpu.memory_space<vmem>>, vector<1x16x128xf32>
    %1 = vector.shape_cast %0 : vector<1x16x128xf32> to vector<16x128xf32>
    %c0_2 = arith.constant 0 : index
    %c0_3 = arith.constant 0 : index
    %2 = vector.load %arg4[%c0_2, %c0_3] : memref<128x64xf32, #tpu.memory_space<vmem>>, vector<128x64xf32>
    %cst = arith.constant dense<0.000000e+00> : vector<16x64xf32>
    %3 = tpu.matmul %1, %2, %cst {dimension_numbers = #tpu.dot_dimension_numbers<[1], [0], [0], [1], [0, 0, 1, 1], [], []>} : vector<16x128xf32>, vector<128x64xf32>, vector<16x64xf32> -> vector<16x64xf32>
    %c0_4 = arith.constant 0 : index
    %c0_5 = arith.constant 0 : index
    %4 = vector.load %arg5[%c0_4, %c0_5] : memref<1x64xf32, #tpu.memory_space<vmem>>, vector<1x64xf32>
    %5 = vector.broadcast %4 : vector<1x64xf32> to vector<16x64xf32>
    %6 = arith.addf %3, %5 : vector<16x64xf32>
    %cst_6 = arith.constant 0.000000e+00 : f32
    %7 = vector.broadcast %cst_6 : f32 to vector<16x64xf32>
    %8 = arith.maximumf %6, %7 : vector<16x64xf32>
    %c0_7 = arith.constant 0 : index
    %c0_8 = arith.constant 0 : index
    %9 = vector.load %arg6[%c0_7, %c0_8] : memref<64x4xf32, #tpu.memory_space<vmem>>, vector<64x4xf32>
    %cst_9 = arith.constant dense<0.000000e+00> : vector<16x4xf32>
    %10 = tpu.matmul %8, %9, %cst_9 {dimension_numbers = #tpu.dot_dimension_numbers<[1], [0], [0], [1], [0, 0, 1, 1], [], []>} : vector<16x64xf32>, vector<64x4xf32>, vector<16x4xf32> -> vector<16x4xf32>
    %c0_10 = arith.constant 0 : index
    %11 = memref.load %arg1[%c0_10] : memref<1xf32, #tpu.memory_space<smem>>
    %12 = vector.broadcast %11 : f32 to vector<16x4xf32>
    %13 = arith.addf %10, %12 : vector<16x4xf32>
    %c0_11 = arith.constant 0 : index
    %c0_12 = arith.constant 0 : index
    %c0_13 = arith.constant 0 : index
    %14 = vector.load %arg3[%c0_11, %c0_12, %c0_13] : memref<1x16x1xf32, #tpu.memory_space<vmem>>, vector<1x16x1xf32>
    %15 = vector.shape_cast %14 : vector<1x16x1xf32> to vector<16x1xf32>
    %cst_14 = arith.constant 0.000000e+00 : f32
    %16 = vector.broadcast %cst_14 : f32 to vector<16x1xf32>
    %17 = arith.cmpf oeq, %15, %16 : vector<16x1xf32>
    %cst_15 = arith.constant -1.000000e+09 : f32
    %18 = vector.shape_cast %17 : vector<16x1xi1> to vector<16x1xi1>
    %19 = vector.broadcast %18 : vector<16x1xi1> to vector<16x4xi1>
    %20 = vector.broadcast %cst_15 : f32 to vector<16x4xf32>
    %21 = arith.select %19, %20, %13 : vector<16x4xi1>, vector<16x4xf32>
    %cst_16 = arith.constant dense<0xFF800000> : vector<4xf32>
    %22 = vector.multi_reduction <maximumf>, %21, %cst_16 [0] : vector<16x4xf32> to vector<4xf32>
    %23 = vector.shape_cast %22 : vector<4xf32> to vector<1x4xf32>
    %24 = vector.broadcast %23 : vector<1x4xf32> to vector<16x4xf32>
    %25 = arith.subf %21, %24 : vector<16x4xf32>
    %26 = math.exp %25 : vector<16x4xf32>
    %cst_17 = arith.constant dense<0.000000e+00> : vector<4xf32>
    %27 = vector.multi_reduction <add>, %26, %cst_17 [0] : vector<16x4xf32> to vector<4xf32>
    %28 = vector.shape_cast %27 : vector<4xf32> to vector<1x4xf32>
    %29 = tpu.reciprocal %28 {approx = true} : vector<1x4xf32> -> vector<1x4xf32>
    %30 = vector.broadcast %29 : vector<1x4xf32> to vector<16x4xf32>
    %31 = arith.mulf %26, %30 : vector<16x4xf32>
    %c0_18 = arith.constant 0 : index
    %c0_19 = arith.constant 0 : index
    %32 = vector.load %arg7[%c0_18, %c0_19] : memref<4x128xf32, #tpu.memory_space<vmem>>, vector<4x128xf32>
    %cst_20 = arith.constant dense<0.000000e+00> : vector<16x128xf32>
    %33 = tpu.matmul %31, %32, %cst_20 {dimension_numbers = #tpu.dot_dimension_numbers<[1], [0], [0], [1], [0, 0, 1, 1], [], []>} : vector<16x4xf32>, vector<4x128xf32>, vector<16x128xf32> -> vector<16x128xf32>
    %c0_21 = arith.constant 0 : index
    %c0_22 = arith.constant 0 : index
    %c0_23 = arith.constant 0 : index
    %34 = vector.load %arg8[%c0_21, %c0_22, %c0_23] : memref<1x16x128xf32, #tpu.memory_space<vmem>>, vector<1x16x128xf32>
    %35 = vector.shape_cast %34 : vector<1x16x128xf32> to vector<16x128xf32>
    %36 = arith.mulf %33, %35 : vector<16x128xf32>
    %cst_24 = arith.constant dense<0.000000e+00> : vector<128xf32>
    %37 = vector.multi_reduction <add>, %36, %cst_24 [0] : vector<16x128xf32> to vector<128xf32>
    %38 = vector.shape_cast %37 : vector<128xf32> to vector<1x128xf32>
    %c0_25 = arith.constant 0 : index
    %c0_26 = arith.constant 0 : index
    %c0_27 = arith.constant 0 : index
    %39 = vector.load %arg9[%c0_25, %c0_26, %c0_27] : memref<1x1x128xf32, #tpu.memory_space<vmem>>, vector<1x1x128xf32>
    %40 = vector.shape_cast %39 : vector<1x1x128xf32> to vector<1x128xf32>
    %41 = vector.shape_cast %38 : vector<1x128xf32> to vector<1x1x128xf32>
    tpu.vector_store %arg9[%c0_25, %c0_26, %c0_27], %41 {strides = array<i32>} : memref<1x1x128xf32, #tpu.memory_space<vmem>>, vector<1x1x128xf32>,
    return
  }
  func.func @transform_0(%arg0: i32) -> i32 {
    %c0_i32 = arith.constant 0 : i32
    %c0_i32_0 = arith.constant 0 : i32
    return %c0_i32 : i32
  }
  func.func @transform_1(%arg0: i32) -> (i32, i32, i32) {
    %c0_i32 = arith.constant 0 : i32
    %c0_i32_0 = arith.constant 0 : i32
    %c0_i32_1 = arith.constant 0 : i32
    return %arg0, %c0_i32, %c0_i32_0 : i32, i32, i32
  }
  func.func @transform_2(%arg0: i32) -> (i32, i32, i32) {
    %c0_i32 = arith.constant 0 : i32
    %c0_i32_0 = arith.constant 0 : i32
    %c0_i32_1 = arith.constant 0 : i32
    return %arg0, %c0_i32, %c0_i32_0 : i32, i32, i32
  }
  func.func @transform_3(%arg0: i32) -> (i32, i32) {
    %c0_i32 = arith.constant 0 : i32
    %c0_i32_0 = arith.constant 0 : i32
    %c0_i32_1 = arith.constant 0 : i32
    return %c0_i32, %c0_i32_0 : i32, i32
  }
  func.func @transform_4(%arg0: i32) -> (i32, i32) {
    %c0_i32 = arith.constant 0 : i32
    %c0_i32_0 = arith.constant 0 : i32
    %c0_i32_1 = arith.constant 0 : i32
    return %c0_i32, %c0_i32_0 : i32, i32
  }
  func.func @transform_5(%arg0: i32) -> (i32, i32) {
    %c0_i32 = arith.constant 0 : i32
    %c0_i32_0 = arith.constant 0 : i32
    %c0_i32_1 = arith.constant 0 : i32
    return %c0_i32, %c0_i32_0 : i32, i32
  }
  func.func @transform_6(%arg0: i32) -> (i32, i32) {
    %c0_i32 = arith.constant 0 : i32
    %c0_i32_0 = arith.constant 0 : i32
    %c0_i32_1 = arith.constant 0 : i32
    return %c0_i32, %c0_i32_0 : i32, i32
  }
  func.func @transform_7(%arg0: i32) -> (i32, i32, i32) {
    %c0_i32 = arith.constant 0 : i32
    %c0_i32_0 = arith.constant 0 : i32
    %c0_i32_1 = arith.constant 0 : i32
    return %arg0, %c0_i32, %c0_i32_0 : i32, i32, i32
  }
  func.func @transform_8(%arg0: i32) -> (i32, i32, i32) {
    %c0_i32 = arith.constant 0 : i32
    %c0_i32_0 = arith.constant 0 : i32
    %c0_i32_1 = arith.constant 0 : i32
    return %arg0, %c0_i32, %c0_i32_0 : i32, i32, i32
  }
}

</mosaic_0001>

<bundles_post_ra>
// kernel: tpu_custom_call.1
= control target key start
LH: loop header
LB: loop body
LE: loop exit
PB: predicated region body
PF: predicated region fallthrough
CT: control target
= control target key end

     0   :  { %s1229_s0 = inlined_call_operand.<no memory space> [shape: f32[1], index: 0, kind: input, shape index: {}]   ;;  %s1230_s1 = inlined_call_operand.vmem [shape: f32[2,16,128], index: 1, kind: input, shape index: {}]   ;;  %s1231_s2 = inlined_call_operand.vmem [shape: f32[2,16,1], index: 2, kind: input, shape index: {}]   ;;  %s1232_s3 = inlined_call_operand.vmem [shape: f32[128,64], index: 3, kind: input, shape index: {}]   ;;  %s1233_s4 = inlined_call_operand.vmem [shape: f32[1,64], index: 4, kind: input, shape index: {}]   ;;  %s1234_s5 = inlined_call_operand.vmem [shape: f32[64,4], index: 5, kind: input, shape index: {}]   ;;  %s1235_s6 = inlined_call_operand.vmem [shape: f32[4,128], index: 6, kind: input, shape index: {}]   ;;  %s1236_s7 = inlined_call_operand.vmem [shape: f32[2,16,128], index: 7, kind: input, shape index: {}]   ;;  %s1237_s8 = inlined_call_operand.hbm [shape: f32[2,1,128], index: 8, kind: output, shape index: {}]  }
   0x1   :  { %13 = sst [smem:[#allocation2]] %s1229_s0 }
   0x2   :  { %14 = vsyncpa [#allocation4], 0 }
   0x3   :  { %16 = vsyncpa [#allocation4 + $0x1], 0  ;;  %s1043_s29 = smov 0   ;;  %s1045_s30 = smov 0  }
   0x4   :  { %s1047_s9 = smov 0   ;;  %s1049_s10 = smov 0  }
   0x5 LB: > { %s1064_s0 = sadd.s32 4294967295, %s991_s10   ;;  %s772_s11 = sadd.s32 4294967294, %s991_s10   ;;  %s991_s10 = sphi %s1049_s10, %s1243_s10   ;;  %s987_s9 = sphi %s1047_s9, %s1242_s9   ;;  %s983_s30 = sphi %s1045_s30, %s1241_s30   ;;  %s979_s29 = sphi %s1043_s29, %s1240_s29  }
   0x6   : > { %s1068_s12 = sadd.s32 1, %s991_s10   ;;  %s212_s13 = sadd.s32 1, %s987_s9 }
   0x7   : > { %s209_s14 = ssub.s32 %s991_s10, %s1068_s12  ;;  %p222_p0 = scmp.ne.s32.totalorder %s987_s9, %s983_s30 }
   0x8   : > { %p210_p1 = scmp.eq.s32.totalorder %s209_s14, 0  ;;  %p223_p2 = scmp.eq.s32.totalorder %s1064_s0, 1 }
   0x9   : > { %p228_p3 = scmp.ne.s32.totalorder %s983_s30, %s979_s29  ;;  %p229_p4 = scmp.eq.s32.totalorder %s772_s11, 1 }
   0xa   : > { %s1079_s15 = scalar_select %p210_p1, %s987_s9, %s212_s13  }
   0xb   : > { %p1081_p5 = por %p223_p2, %p222_p0  ;;  %p1085_p6 = por %p229_p4, %p228_p3 }
   0xc   : > { %p775_p7 = scmp.ge.s32.totalorder %s991_s10, 1  ;;  %p286_p8 = scmp.lt.s32.totalorder %s991_s10, 3 }
   0xe   : > { %p287_p9 = pnand %p775_p7, %p286_p8 }
   0xf   : > { %p329_p10 = scmp.lt.s32.totalorder (!%p287_p9), %s1064_s0, 1  ;;  %s454_s28 = sld [smem:[#allocation2]] (!%p287_p9) }
  0x10   : > { %290 = sbr.rel (%p287_p9) target bundleno = 742 (0x2e6), region = 52  ;;  %s788_s19 = sshll.u32 (!%p287_p9), %s1064_s0, 4 }
  0x11   : > { %s691_s23 = scalar_lea.hbm (!%p287_p9), %s1237_s8, %s788_s19  ;;  %s994_s26 = smov (!%p287_p9), [#allocation3]  }
  0x15   : > { %v361_v0 = vld [vmem:[%s1232_s3 + $0x78] sm:$0xff]  ;;  %v360_v1 = vld [vmem:[%s1232_s3 + $0x70] sm:$0xff]  ;;  %v359_v2 = vld [vmem:[%s1232_s3 + $0x68] sm:$0xff]  ;;  %s330_s24 = scalar_select %p329_p10, %s1064_s0, 1  ;;  %v993_v26 = vmov 0   ;;  %vm456_vm2 = vcmask 523264   ;;  %v455_v40 = vstv %s454_s28 }
  0x16   : > { %825 = vmatprep.subr.mxu0 %v361_v0  ;;  %v358_v3 = vld [vmem:[%s1232_s3 + $0x60] sm:$0xff]  ;;  %v453_v4 = vld [vmem:[%s1234_s5 + $0x38] sm:$0xff]  ;;  %v452_v7 = vld [vmem:[%s1234_s5 + $0x30] sm:$0xff]  ;;  %924 = vset.pattern.permute.xlu0 %v993_v26  ;;  %vm589_vm3 = vcmask 1043456   ;;  %vm554_vm5 = vcmask 31744   ;;  %s935_s28 = sshll.u32 %s994_s26, 4  ;;  %s936_s28 = int_to_ptr.vmem [resolvable:$false] %s935_s28 }
  0x17   : > { %826 = vmatpush3.msra.mxu0 %v361_v0  ;;  %s1105_s27 = sshll.u32 %s330_s24, 4  ;;  %v357_v5 = vld [vmem:[%s1232_s3 + $0x58] sm:$0xff]  ;;  %860 = vmatprep.subr.mxu1 %v453_v4  ;;  %v356_v8 = vld [vmem:[%s1232_s3 + $0x50] sm:$0xff]  ;;  %v451_v9 = vld [vmem:[%s1234_s5 + $0x28] sm:$0xff]  ;;  %s937_s0 = scalar_lea.vmem %s936_s28, 32 }
  0x18   : > { %827 = vmatprep.subr.mxu0 %v360_v1  ;;  %s1111_s13 = scalar_lea.vmem %s1230_s1, %s1105_s27  ;;  %861 = vmatpush3.msra.mxu1 %v453_v4  ;;  %v355_v10 = vld [vmem:[%s1232_s3 + $0x48] sm:$0xff]  ;;  %v450_v11 = vld [vmem:[%s1234_s5 + $0x20] sm:$0xff]  ;;  %v353_v13 = vld [vmem:[%s1232_s3 + $0x38] sm:$0xff]  ;;  %s338_s22 = scalar_lea.vmem %s1231_s2, %s1105_s27 }
  0x19   : > { %828 = vmatpush3.msra.mxu0 %v360_v1  ;;  %v344_v6 = vld [vmem:[%s1111_s13] sm:$0xff]  ;;  %862 = vmatprep.subr.mxu1 %v452_v7  ;;  %v352_v14 = vld [vmem:[%s1232_s3 + $0x30] sm:$0xff]  ;;  %v351_v15 = vld [vmem:[%s1232_s3 + $0x28] sm:$0xff]  ;;  %s343_s18 = scalar_lea.vmem %s1236_s7, %s1105_s27 }
  0x1a   : > { %829 = vmatprep.subr.mxu0 %v359_v2  ;;  %857 = vmatprep.mubr.f32.mxu0 %v344_v6  ;;  %v354_v12 = vld [vmem:[%s1232_s3 + $0x40] sm:$0xff]  ;;  %v349_v17 = vld [vmem:[%s1232_s3 + $0x18] sm:$0xff]  ;;  %v348_v18 = vld [vmem:[%s1232_s3 + $0x10] sm:$0xff] }
  0x1b   : > { %830 = vmatpush3.msra.mxu0 %v359_v2  ;;  %863 = vmatpush3.msra.mxu1 %v452_v7  ;;  %v350_v16 = vld [vmem:[%s1232_s3 + $0x20] sm:$0xff]  ;;  %v347_v19 = vld [vmem:[%s1232_s3 + $0x8] sm:$0xff]  ;;  %v449_v22 = vld [vmem:[%s1234_s5 + $0x18] sm:$0xff] }
  0x1c   : > { %831 = vmatprep.subr.mxu0 %v358_v3  ;;  %864 = vmatprep.subr.mxu1 %v451_v9  ;;  %v346_v20 = vld [vmem:[%s1232_s3] sm:$0xff]  ;;  %v345_v21 = vld [vmem:[%s1111_s13 + $0x8] sm:$0xff]  ;;  %v448_v23 = vld [vmem:[%s1234_s5 + $0x10] sm:$0xff]  ;;  %s327_s13 = sand.u32 1, %s983_s30  }
  0x1d   : > { %832 = vmatpush3.msra.mxu0 %v358_v3  ;;  %865 = vmatpush3.msra.mxu1 %v451_v9  ;;  %v447_v24 = vld [vmem:[%s1234_s5 + $0x8] sm:$0xff]  ;;  %v446_v25 = vld [vmem:[%s1234_s5] sm:$0xff]  ;;  %s328_s20 = scalar_lea.vmem [#allocation3], %s327_s13  ;;  %s681_s24 = scalar_lea.sflag [#allocation4], %s327_s13 }
  0x1e   : > { %833 = vmatprep.subr.mxu0 %v357_v5  ;;  %866 = vmatprep.subr.mxu1 %v450_v11  ;;  %v538_v27 = vld [vmem:[%s338_s22] sm:$0xff]  ;;  %v539_v28 = vld [vmem:[%s338_s22 + $0x8] sm:$0xff]  ;;  %s693_s21 = sshll.u32 %s328_s20, 4  ;;  %s694_s21 = int_to_ptr.vmem [resolvable:$true] %s693_s21 }
  0x1f   : > { %834 = vmatpush3.msra.mxu0 %v357_v5  ;;  %867 = vmatpush3.msra.mxu1 %v450_v11  ;;  %vm540_vm0 = vcmp.eq.f32.partialorder %v538_v27, 0.0  ;;  %vm541_vm1 = vcmp.eq.f32.partialorder %v539_v28, 0.0  ;;  %v782_v31 = vld [vmem:[%s1233_s4] ss:$0 sm:$0xff]  ;;  %s931_s25 = scalar_lea.vmem %s694_s21, 16  ;;  %p938_p0 = scmp.lt.s32.totalorder %s694_s21, %s936_s28 }
  0x20   : > { %835 = vmatprep.subr.mxu0 %v356_v8  ;;  %868 = vmatprep.subr.mxu1 %v449_v22  ;;  %v542_v29 = vsel %vm540_vm0, 1, %v993_v26  ;;  %v543_v30 = vsel %vm541_vm1, 1, %v993_v26  ;;  %v582_v38 = vld [vmem:[%s1235_s6] sm:$0xf]  ;;  %p932_p11 = scmp.ne.s32.totalorder %s694_s21, %s931_s25  ;;  %p939_p1 = scmp.lt.s32.totalorder %s937_s0, %s931_s25 }
  0x21   : > { %836 = vmatpush3.msra.mxu0 %v356_v8  ;;  %869 = vmatpush3.msra.mxu1 %v449_v22 }
  0x22   : > { %837 = vmatprep.subr.mxu0 %v355_v10  ;;  %870 = vmatprep.subr.mxu1 %v448_v23  ;;  %p933_p12 = pnand %p932_p11, %p1081_p5  ;;  %p940_p2 = por %p939_p1, %p938_p0 }
  0x23   : > { %838 = vmatpush3.msra.mxu0 %v355_v10  ;;  %871 = vmatpush3.msra.mxu1 %v448_v23 }
  0x24   : > { %839 = vmatprep.subr.mxu0 %v354_v12  ;;  %872 = vmatprep.subr.mxu1 %v447_v24  ;;  %p934_p13 = pneg %p933_p12 }
  0x25   : > { %840 = vmatpush3.msra.mxu0 %v354_v12  ;;  %873 = vmatpush3.msra.mxu1 %v447_v24  ;;  %v669_v12 = vld [vmem:[%s343_s18 + $0x8] sm:$0xff] }
  0x26   : > { %841 = vmatprep.subr.mxu0 %v353_v13  ;;  %874 = vmatprep.subr.mxu1 %v446_v25  ;;  %p941_p3 = pnand %p940_p2, %p934_p13 }
  0x27   : > { %842 = vmatpush3.msra.mxu0 %v353_v13  ;;  %875 = vmatpush3.msra.mxu1 %v446_v25  ;;  %v668_v13 = vld [vmem:[%s343_s18] sm:$0xff] }
  0x28   : > { %843 = vmatprep.subr.mxu0 %v352_v14  ;;  %545 = vperm.xlu0 %924, %v542_v29  }
  0x29   : > { %844 = vmatpush3.msra.mxu0 %v352_v14  ;;  %879 = vmatprep.subr.msk.mxu1 %vm589_vm3, %v582_v38 }
  0x2a   : > { %845 = vmatprep.subr.mxu0 %v351_v15 }
  0x2b   : > { %846 = vmatpush3.msra.mxu0 %v351_v15 }
  0x2c   : > { %847 = vmatprep.subr.mxu0 %v350_v16  ;;  %548 = vperm.xlu0 %924, %v543_v30  }
  0x2d   : > { %848 = vmatpush3.msra.mxu0 %v350_v16 }
  0x2e   : > { %849 = vmatprep.subr.mxu0 %v349_v17 }
  0x2f   : > { %850 = vmatpush3.msra.mxu0 %v349_v17 }
  0x30   : > { %851 = vmatprep.subr.mxu0 %v348_v18 }
  0x31   : > { %852 = vmatpush3.msra.mxu0 %v348_v18 }
  0x32   : > { %853 = vmatprep.subr.mxu0 %v347_v19 }
  0x33   : > { %854 = vmatpush3.msra.mxu0 %v347_v19 }
  0x34   : > { %855 = vmatprep.subr.mxu0 %v346_v20 }
  0x35   : > { %856 = vmatpush3.msra.mxu0 %v346_v20 }
  0x36   : > { %858 = vmatmul.mubr.f32.vlgmr.msra.gmra.mxu0 %v345_v21 }
  0xa3   : > { %v546_v39 = vpop.permute.xlu0 %545 }
  0xa4   : > { %vm550_vm6 = vcmp.eq.s32.totalorder %v546_v39, 1 }
  0xa7   : > { %v549_v41 = vpop.permute.xlu0 %548 }
  0xa8   : > { %vm551_vm4 = vcmp.eq.s32.totalorder %v549_v41, 1 }
  0xf6   : > { %v859_v32 = vpop.f32.mrf.mxu0 }
  0xf7   : > { %v441_v33 = vadd.f32 %v859_v32, %v782_v31 }
  0xf8   : > { %v435_v34 = vpop.f32.mrf.mxu0 }
  0xf9   : > { %v436_v35 = vadd.f32 %v782_v31, %v435_v34  ;;  %v445_v37 = vmax.f32 %v441_v33, 0.0 }
  0xfb   : > { %v444_v36 = vmax.f32 %v436_v35, 0.0 }
  0xfd   : > { %876 = vmatprep.mubr.msk.f32.mxu1 %vm456_vm2, %v444_v36 }
  0xfe   : > { %877 = vmatmul.mubr.msk.f32.vlgmr.msra.gmra.mxu1 %vm456_vm2, %v445_v37 }
  0xff   : > { %880 = vmatpush3.msk.msra.mxu1 %vm589_vm3, %v582_v38 }
 0x1be   : > { %v878_v42 = vpop.f32.mrf.mxu1 }
 0x1bf   : > { %v535_v43 = vadd.f32 %v878_v42, %v455_v40 }
 0x1c0   : > { %v529_v44 = vpop.f32.mrf.mxu1 }
 0x1c1   : > { %v553_v45 = vsel %vm551_vm4, -1e+09, %v535_v43  ;;  %v530_v46 = vadd.f32 %v529_v44, %v455_v40 }
 0x1c2   : > { %v556_v48 = vsel %vm554_vm5, %v553_v45, -inf }
 0x1c3   : > { %v552_v47 = vsel %vm550_vm6, -1e+09, %v530_v46 }
 0x1c4   : > { %v555_v49 = vsel %vm554_vm5, %v552_v47, -inf }
 0x1c5   : > { %v557_v50 = vmax.f32 %v555_v49, %v556_v48 }
 0x1c7   : > { %v558_v51 = vrot.slane %v557_v50, 4 }
 0x1c9   : > { %v559_v52 = vmax.f32 %v557_v50, %v558_v51 }
 0x1cb   : > { %v560_v53 = vrot.slane %v559_v52, 2 }
 0x1cd   : > { %v561_v54 = vmax.f32 %v559_v52, %v560_v53 }
 0x1cf   : > { %v562_v55 = vrot.slane %v561_v54, 1 }
 0x1d1   : > { %v563_v56 = vmax.f32 %v561_v54, %v562_v55 }
 0x1d3   : > { %v564_v57 = vsub.f32 %v552_v47, %v563_v56  ;;  %v565_v58 = vsub.f32 %v553_v45, %v563_v56 }
 0x1d5   : > { %v566_v59 = vmul.f32 1.442695, %v564_v57  ;;  %v568_v60 = vmul.f32 1.442695, %v565_v58 }
 0x1d7   : > { %925 = vpow2.f32 %v566_v59 }
 0x1d8   : > { %927 = vpow2.f32 %v568_v60 }
 0x1e4   : > { %v926_v61 = vpop.eup %925 }
 0x1e5   : > { %v928_v62 = vpop.eup %927  ;;  %v570_v63 = vsel %vm554_vm5, %v926_v61, 0.0 }
 0x1e6   : > { %v571_v0 = vsel %vm554_vm5, %v928_v62, 0.0 }
 0x1e7   : > { %v572_v1 = vadd.f32 %v571_v0, %v570_v63 }
 0x1e9   : > { %v573_v2 = vrot.slane %v572_v1, 4 }
 0x1eb   : > { %v574_v3 = vadd.f32 %v573_v2, %v572_v1 }
 0x1ed   : > { %v575_v4 = vrot.slane %v574_v3, 2 }
 0x1ef   : > { %v576_v5 = vadd.f32 %v575_v4, %v574_v3 }
 0x1f1   : > { %v577_v6 = vrot.slane %v576_v5, 1 }
 0x1f3   : > { %v578_v7 = vadd.f32 %v577_v6, %v576_v5 }
 0x1f5   : > { %929 = vrcp.f32 %v578_v7 }
 0x202   : > { %v930_v8 = vpop.eup %929 }
 0x203   : > { %v580_v9 = vmul.f32 %v930_v8, %v926_v61  ;;  %v581_v10 = vmul.f32 %v930_v8, %v928_v62 }
 0x205   : > { %881 = vmatprep.mubr.msk.f32.mxu1 %vm554_vm5, %v580_v9 }
 0x206   : > { %882 = vmatmul.mubr.msk.f32.vlgmr.msra.gmra.mxu1 %vm554_vm5, %v581_v10 }
 0x2c6   : > { %v883_v11 = vpop.f32.mrf.mxu1 }
 0x2c7   : > { %v671_v15 = vmul.f32 %v883_v11, %v669_v12 }
 0x2c8   : > { %v659_v14 = vpop.f32.mrf.mxu1 }
 0x2c9   : > { %v670_v16 = vmul.f32 %v668_v13, %v659_v14 }
 0x2cb   : > { %v672_v17 = vadd.f32 %v671_v15, %v670_v16 }
 0x2cd   : > { %v673_v18 = vrot.slane %v672_v17, 4 }
 0x2cf   : > { %v674_v19 = vadd.f32 %v673_v18, %v672_v17 }
 0x2d1   : > { %v675_v20 = vrot.slane %v674_v19, 2 }
 0x2d3   : > { %v676_v21 = vadd.f32 %v675_v20, %v674_v19 }
 0x2d5   : > { %v677_v22 = vrot.slane %v676_v21, 1 }
 0x2d7   : > { %v678_v23 = vadd.f32 %v677_v22, %v676_v21 }
 0x2d9   : > { %679 = vst [vmem:[%s328_s20] sm:$0x1] %v678_v23 }
 0x2da   : > { %944 = shalt.err (!%p941_p3)
}
 0x2db   : > { %s945_s11 = scalar_lea.hbm %s691_s23, 16  ;;  %s949_s13 = scalar_lea.hbm %s1237_s8, 32 }
 0x2dc   : > { %p946_p4 = scmp.ne.s32.totalorder %s691_s23, %s945_s11  ;;  %p950_p9 = scmp.lt.s32.totalorder %s691_s23, %s1237_s8 }
 0x2dd   : > { %p951_p10 = scmp.lt.s32.totalorder %s949_s13, %s945_s11 }
 0x2de   : > { %p947_p7 = pnand %p946_p4, %p1081_p5 }
 0x2df   : > { %p952_p11 = por %p951_p10, %p950_p9 }
 0x2e0   : > { %p948_p8 = pneg %p947_p7 }
 0x2e2   : > { %p953_p12 = pnand %p952_p11, %p948_p8 }
 0x2e4   : > { %956 = shalt.err (!%p953_p12)
}
 0x2e5   : > { %884 = dma.vmem_to_hbm [thread:$0]  (%p1081_p5), %s694_s21, 16, %s691_s23, %s681_s24  }
 0x2e6 PF: > { %p890_p13 = scmp.ge.s32.totalorder %s991_s10, 2  ;;  %s705_s22 = sand.u32 1, %s979_s29  }
 0x2e7   : > { %s706_s27 = scalar_lea.sflag [#allocation4], %s705_s22 }
 0x2e8   : > { %p887_p0 = pnand %p890_p13, %p1085_p6 }
 0x2ea   : > { %p888_p1 = pneg %p887_p0 }
 0x2ec   : > { %974 = dma.done.wait (%p888_p1), %s706_s27, 16  }
 0x2ed   : > { %976 = vsyncadd (%p888_p1), %s706_s27, 4294967280  ;;  %p19_p2 = scmp.ge.s32.totalorder %s1068_s12, 4   ;;  %s1240_s29 = smov %s983_s30 }
 0x2ee   : > { %s1241_s30 = smov %s987_s9  ;;  %s1242_s9 = smov %s1079_s15 }
 0x2ef   : > { %s1243_s10 = smov %s1068_s12  ;;  %21 = sbr.rel (!%p19_p2) target bundleno = 5 (0x5), region = 93 }
 0x2f4   :  { %710 = vsyncpa [#allocation4], 1 }
 0x2f5   :  { %712 = vsyncpa [#allocation4 + $0x1], 1 }

</bundles_post_ra>
